<compile_context>
chip_gen: v7x
topology: tpu7x:2x2x1
jax: 0.10.0
libtpu: 0.0.40
codegen_flags: <defaults>
</compile_context>

<pallas_src>
import functools

import jax
import jax.numpy as jnp
from jax.experimental import pallas as pl
from jax.experimental.pallas import tpu as pltpu


# Rows per block: big enough to amortize the ~0.35us per-grid-step overhead,
# small enough to fit the default scoped-VMEM budget on v5e / v6e / v7x
# (2 inputs x 2 pipeline buffers x (512, C) tiles + f32 temporaries).
_TM_MAX = 512


# ----------------------------- Pallas kernel ------------------------------ #
def _soft_ce_partial_kernel(x_ref, t_ref, out_ref, *, valid_rows, block_rows):
    """Per-block partial sum: sum_{r,c} t[r,c] * (logsumexp(x[r,:]) - x[r,c])."""
    x = x_ref[...].astype(jnp.float32)            # (TM, C), cast is free VPU work
    t = t_ref[...].astype(jnp.float32)            # (TM, C)

    # Ragged last block: zero out rows past the end of the array (their VMEM
    # contents are undefined; zeroing both x and t gives exactly 0 contribution).
    if valid_rows % block_rows != 0:
        row = (pl.program_id(0) * block_rows
               + jax.lax.broadcasted_iota(jnp.int32, (block_rows, 1), 0))
        keep = row < valid_rows
        x = jnp.where(keep, x, 0.0)
        t = jnp.where(keep, t, 0.0)

    m = jnp.max(x, axis=-1, keepdims=True)                                # (TM, 1)
    lse = jnp.log(jnp.sum(jnp.exp(x - m), axis=-1, keepdims=True)) + m    # (TM, 1)
    # loss_row = sum_c t*(lse - x); accumulate the whole block into one scalar.
    part = jnp.sum(t * (lse - x), axis=(0, 1), keepdims=True)             # (1, 1)
    out_ref[...] = part.reshape(1, 1, 1)


def _soft_ce_sum(x, target, tm_max=_TM_MAX):
    """Sum over rows of -sum_c target*log_softmax(x), computed by a Pallas kernel."""
    assert x.shape == target.shape, (x.shape, target.shape)
    M, C = x.shape

    # Keep the sublane (second-minor) block dim a multiple of 8: tiny inputs
    # (e.g. the cls loss with M == batch) are zero-padded up to 8 rows; padded
    # rows have zero targets and therefore contribute exactly 0 to the sum.
    if M < 8:
        x = jnp.pad(x, ((0, 8 - M), (0, 0)))
        target = jnp.pad(target, ((0, 8 - M), (0, 0)))
    Mp = x.shape[0]

    tm = max(8, min(tm_max, (Mp // 8) * 8))       # multiple of 8, capped at tm_max
    num_blocks = pl.cdiv(Mp, tm)                  # ragged tail handled in-kernel

    kernel = functools.partial(
        _soft_ce_partial_kernel, valid_rows=Mp, block_rows=tm)

    partials = pl.pallas_call(
        kernel,
        out_shape=jax.ShapeDtypeStruct((num_blocks, 1, 1), jnp.float32),
        grid=(num_blocks,),
        in_specs=[
            # Native dtype (bf16 logits stay bf16 in HBM); f32 cast happens in-kernel.
            pl.BlockSpec((tm, C), lambda i: (i, 0)),
            pl.BlockSpec((tm, C), lambda i: (i, 0)),
        ],
        # One f32 partial per block at a distinct index -> negligible output
        # traffic, and the row axis can stay "parallel" (v7x: both TensorCores).
        out_specs=pl.BlockSpec((1, 1, 1), lambda i: (i, 0, 0)),
        compiler_params=pltpu.CompilerParams(
            dimension_semantics=("parallel",),
            vmem_limit_bytes=48 * 1024 * 1024,
        ),
    )(x, target)

    return jnp.sum(partials)


def soft_target_cross_entropy(x, target):
    """Equivalent of SoftTargetCrossEntropy.forward (mean over rows)."""
    n_rep = x.shape[0]
    n = target.shape[0]
    if n != n_rep:
        # TODO(synk): cold fallback (never reached from TokenLabelGTCrossEntropy);
        # a broadcasting index_map would avoid materializing the repeat.
        target = jnp.tile(target, (n_rep // n, 1))
    return _soft_ce_sum(x, target) / x.shape[0]


# --------------------------- Module equivalent ----------------------------- #
def token_label_gt_cross_entropy(x, target, *, dense_weight=1.0, cls_weight=1.0):
    """Forward of TokenLabelGTCrossEntropy.

    x      : tuple (output(B,C), aux_output(B,N,C), bb=(bbx1,bby1,bbx2,bby2))
    target : (B, C) soft labels OR (B, C, 2+N) dense token labels.
    """
    output, aux_output, bb = x
    bbx1, bby1, bbx2, bby2 = bb
    B, N, C = aux_output.shape

    if target.ndim == 2:
        target_cls = target
        # TODO(synk): avoid materializing the N-fold repeat by gridding the aux
        # loss over (batch, token-tile) and reusing one (1, C) target block.
        target_aux = jnp.repeat(target, N, axis=0)              # (B*N, C)
    else:
        ground_truth = target[:, :, 0]                          # (B, C)
        target_cls = target[:, :, 1]                            # (B, C)
        same = (jnp.argmax(ground_truth, axis=-1)
                == jnp.argmax(target_cls, axis=-1)).astype(jnp.float32)
        ratio = (0.9 - 0.4 * same)[:, None]                     # (B, 1)
        target_cls = target_cls * ratio + ground_truth * (1.0 - ratio)
        # TODO(synk): feed target[:, :, 2:] to the kernel in its native (B, C, N)
        # layout and transpose in-kernel to drop this materialized transpose pass.
        target_aux = jnp.transpose(target[:, :, 2:], (0, 2, 1)).reshape(-1, C)

    lam = 1.0 - (bbx2 - bbx1) * (bby2 - bby1) / N
    mixed = lam * target_cls + (1.0 - lam) * jnp.flip(target_cls, axis=0)
    target_cls = jnp.where(lam < 1.0, mixed, target_cls)

    loss_cls = soft_target_cross_entropy(output, target_cls)
    loss_aux = soft_target_cross_entropy(aux_output.reshape(-1, C), target_aux)
    return cls_weight * loss_cls + dense_weight * loss_aux


# ------------------------------- reference --------------------------------- #
def _ref_soft_ce(x, t):
    logsm = jax.nn.log_softmax(x.astype(jnp.float32), axis=-1)
    return jnp.mean(jnp.sum(-t.astype(jnp.float32) * logsm, axis=-1))


def _ref_loss(x, target, dense_weight=1.0, cls_weight=1.0):
    output, aux_output, bb = x
    bbx1, bby1, bbx2, bby2 = bb
    B, N, C = aux_output.shape
    gt = target[:, :, 0]
    tc = target[:, :, 1]
    same = (jnp.argmax(gt, -1) == jnp.argmax(tc, -1)).astype(jnp.float32)
    ratio = (0.9 - 0.4 * same)[:, None]
    tc = tc * ratio + gt * (1.0 - ratio)
    ta = jnp.transpose(target[:, :, 2:], (0, 2, 1)).reshape(-1, C)
    lam = 1.0 - (bbx2 - bbx1) * (bby2 - bby1) / N
    tc = jnp.where(lam < 1.0, lam * tc + (1.0 - lam) * jnp.flip(tc, 0), tc)
    return (cls_weight * _ref_soft_ce(output, tc)
            + dense_weight * _ref_soft_ce(aux_output.reshape(-1, C), ta))


# --------------------------------- main ------------------------------------ #
if __name__ == "__main__":
    key = jax.random.PRNGKey(0)
    B, N, C = 2, 8, 32   # small synthetic shapes: batch=2, tokens=8, classes=32

    k1, k2, k3 = jax.random.split(key, 3)
    output = jax.random.normal(k1, (B, C), dtype=jnp.float32)
    aux_output = jax.random.normal(k2, (B, N, C), dtype=jnp.float32)

    # dense token-label target (B, C, 2+N): soft distributions over classes
    raw = jax.random.normal(k3, (B, C, 2 + N), dtype=jnp.float32)
    target = jax.nn.softmax(raw, axis=1)  # normalize over class axis

    # cutmix bounding box (in token units) -> lam < 1 triggers the flip-mix path
    bb = (2.0, 1.0, 5.0, 4.0)

    loss_fn = jax.jit(functools.partial(
        token_label_gt_cross_entropy, dense_weight=1.0, cls_weight=1.0))
    loss = loss_fn((output, aux_output, bb), target)
    loss = jax.block_until_ready(loss)

    ref = _ref_loss((output, aux_output, bb), target)
    assert jnp.allclose(loss, ref, rtol=1e-5, atol=1e-5), (loss, ref)

    print("KERNEL_OK")
</pallas_src>

<mosaic_0001>
module attributes {stable_mosaic.version = 11 : i64} {
  func.func @_soft_ce_partial_kernel(%arg0: i32, %arg1: memref<8x32xf32, #tpu.memory_space<vmem>>, %arg2: memref<8x32xf32, #tpu.memory_space<vmem>>, %arg3: memref<1x1x1xf32, #tpu.memory_space<vmem>>) attributes {dimension_semantics = [#tpu.dimension_semantics<parallel>], iteration_bounds = array<i64: 1>, scalar_prefetch = 0 : i64, scratch_operands = 0 : i64, tpu.core_type = #tpu.core_type<tc>, window_params = [{transform_indices = @transform_0, window_bounds = array<i64: 8, 32>}, {transform_indices = @transform_1, window_bounds = array<i64: 8, 32>}, {transform_indices = @transform_2, window_bounds = array<i64: 1, 1, 1>}]} {
    %c0 = arith.constant 0 : index
    %c0_0 = arith.constant 0 : index
    %0 = vector.load %arg1[%c0, %c0_0] : memref<8x32xf32, #tpu.memory_space<vmem>>, vector<8x32xf32>
    %c0_1 = arith.constant 0 : index
    %c0_2 = arith.constant 0 : index
    %1 = vector.load %arg2[%c0_1, %c0_2] : memref<8x32xf32, #tpu.memory_space<vmem>>, vector<8x32xf32>
    %cst = arith.constant dense<0xFF800000> : vector<8xf32>
    %2 = vector.multi_reduction <maximumf>, %0, %cst [1] : vector<8x32xf32> to vector<8xf32>
    %3 = vector.shape_cast %2 : vector<8xf32> to vector<8x1xf32>
    %4 = vector.broadcast %3 : vector<8x1xf32> to vector<8x32xf32>
    %5 = arith.subf %0, %4 : vector<8x32xf32>
    %6 = math.exp %5 : vector<8x32xf32>
    %cst_3 = arith.constant dense<0.000000e+00> : vector<8xf32>
    %7 = vector.multi_reduction <add>, %6, %cst_3 [1] : vector<8x32xf32> to vector<8xf32>
    %8 = vector.shape_cast %7 : vector<8xf32> to vector<8x1xf32>
    %9 = math.log %8 : vector<8x1xf32>
    %10 = arith.addf %9, %3 : vector<8x1xf32>
    %11 = vector.broadcast %10 : vector<8x1xf32> to vector<8x32xf32>
    %12 = arith.subf %11, %0 : vector<8x32xf32>
    %13 = arith.mulf %1, %12 : vector<8x32xf32>
    %14 = vector.shape_cast %13 : vector<8x32xf32> to vector<1x8x32xf32>
    %cst_4 = arith.constant dense<0.000000e+00> : vector<1xf32>
    %15 = vector.multi_reduction <add>, %14, %cst_4 [1, 2] : vector<1x8x32xf32> to vector<1xf32>
    %16 = vector.shape_cast %15 : vector<1xf32> to vector<1x1x1xf32>
    %17 = vector.extract %16[0, 0, 0] : f32 from vector<1x1x1xf32>
    %18 = vector.broadcast %17 : f32 to vector<1x1xf32>
    %19 = vector.shape_cast %18 : vector<1x1xf32> to vector<1x1x1xf32>
    %c0_5 = arith.constant 0 : index
    %c0_6 = arith.constant 0 : index
    %c0_7 = arith.constant 0 : index
    %20 = vector.load %arg3[%c0_5, %c0_6, %c0_7] : memref<1x1x1xf32, #tpu.memory_space<vmem>>, vector<1x1x1xf32>
    tpu.vector_store %arg3[%c0_5, %c0_6, %c0_7], %19 {strides = array<i32>} : memref<1x1x1xf32, #tpu.memory_space<vmem>>, vector<1x1x1xf32>,
    return
  }
  func.func @transform_0(%arg0: i32) -> (i32, i32) {
    %c0_i32 = arith.constant 0 : i32
    %c0_i32_0 = arith.constant 0 : i32
    return %arg0, %c0_i32 : i32, i32
  }
  func.func @transform_1(%arg0: i32) -> (i32, i32) {
    %c0_i32 = arith.constant 0 : i32
    %c0_i32_0 = arith.constant 0 : i32
    return %arg0, %c0_i32 : i32, i32
  }
  func.func @transform_2(%arg0: i32) -> (i32, i32, i32) {
    %c0_i32 = arith.constant 0 : i32
    %c0_i32_0 = arith.constant 0 : i32
    %c0_i32_1 = arith.constant 0 : i32
    return %arg0, %c0_i32, %c0_i32_0 : i32, i32, i32
  }
}

module attributes {stable_mosaic.version = 11 : i64} {
  func.func @_soft_ce_partial_kernel(%arg0: i32, %arg1: memref<16x32xf32, #tpu.memory_space<vmem>>, %arg2: memref<16x32xf32, #tpu.memory_space<vmem>>, %arg3: memref<1x1x1xf32, #tpu.memory_space<vmem>>) attributes {dimension_semantics = [#tpu.dimension_semantics<parallel>], iteration_bounds = array<i64: 1>, scalar_prefetch = 0 : i64, scratch_operands = 0 : i64, tpu.core_type = #tpu.core_type<tc>, window_params = [{transform_indices = @transform_0, window_bounds = array<i64: 16, 32>}, {transform_indices = @transform_1, window_bounds = array<i64: 16, 32>}, {transform_indices = @transform_2, window_bounds = array<i64: 1, 1, 1>}]} {
    %c0 = arith.constant 0 : index
    %c0_0 = arith.constant 0 : index
    %0 = vector.load %arg1[%c0, %c0_0] : memref<16x32xf32, #tpu.memory_space<vmem>>, vector<16x32xf32>
    %c0_1 = arith.constant 0 : index
    %c0_2 = arith.constant 0 : index
    %1 = vector.load %arg2[%c0_1, %c0_2] : memref<16x32xf32, #tpu.memory_space<vmem>>, vector<16x32xf32>
    %cst = arith.constant dense<0xFF800000> : vector<16xf32>
    %2 = vector.multi_reduction <maximumf>, %0, %cst [1] : vector<16x32xf32> to vector<16xf32>
    %3 = vector.shape_cast %2 : vector<16xf32> to vector<16x1xf32>
    %4 = vector.broadcast %3 : vector<16x1xf32> to vector<16x32xf32>
    %5 = arith.subf %0, %4 : vector<16x32xf32>
    %6 = math.exp %5 : vector<16x32xf32>
    %cst_3 = arith.constant dense<0.000000e+00> : vector<16xf32>
    %7 = vector.multi_reduction <add>, %6, %cst_3 [1] : vector<16x32xf32> to vector<16xf32>
    %8 = vector.shape_cast %7 : vector<16xf32> to vector<16x1xf32>
    %9 = math.log %8 : vector<16x1xf32>
    %10 = arith.addf %9, %3 : vector<16x1xf32>
    %11 = vector.broadcast %10 : vector<16x1xf32> to vector<16x32xf32>
    %12 = arith.subf %11, %0 : vector<16x32xf32>
    %13 = arith.mulf %1, %12 : vector<16x32xf32>
    %14 = vector.shape_cast %13 : vector<16x32xf32> to vector<1x16x32xf32>
    %cst_4 = arith.constant dense<0.000000e+00> : vector<1xf32>
    %15 = vector.multi_reduction <add>, %14, %cst_4 [1, 2] : vector<1x16x32xf32> to vector<1xf32>
    %16 = vector.shape_cast %15 : vector<1xf32> to vector<1x1x1xf32>
    %17 = vector.extract %16[0, 0, 0] : f32 from vector<1x1x1xf32>
    %18 = vector.broadcast %17 : f32 to vector<1x1xf32>
    %19 = vector.shape_cast %18 : vector<1x1xf32> to vector<1x1x1xf32>
    %c0_5 = arith.constant 0 : index
    %c0_6 = arith.constant 0 : index
    %c0_7 = arith.constant 0 : index
    %20 = vector.load %arg3[%c0_5, %c0_6, %c0_7] : memref<1x1x1xf32, #tpu.memory_space<vmem>>, vector<1x1x1xf32>
    tpu.vector_store %arg3[%c0_5, %c0_6, %c0_7], %19 {strides = array<i32>} : memref<1x1x1xf32, #tpu.memory_space<vmem>>, vector<1x1x1xf32>,
    return
  }
  func.func @transform_0(%arg0: i32) -> (i32, i32) {
    %c0_i32 = arith.constant 0 : i32
    %c0_i32_0 = arith.constant 0 : i32
    return %arg0, %c0_i32 : i32, i32
  }
  func.func @transform_1(%arg0: i32) -> (i32, i32) {
    %c0_i32 = arith.constant 0 : i32
    %c0_i32_0 = arith.constant 0 : i32
    return %arg0, %c0_i32 : i32, i32
  }
  func.func @transform_2(%arg0: i32) -> (i32, i32, i32) {
    %c0_i32 = arith.constant 0 : i32
    %c0_i32_0 = arith.constant 0 : i32
    %c0_i32_1 = arith.constant 0 : i32
    return %arg0, %c0_i32, %c0_i32_0 : i32, i32, i32
  }
}

</mosaic_0001>

<bundles_post_ra>
// kernel: token_label_gt_cross_entropy.2
= control target key start
LH: loop header
LB: loop body
LE: loop exit
PB: predicated region body
PF: predicated region fallthrough
CT: control target
= control target key end

     0   :  { %vm14_vm0 = vcmask 261120   ;;  %s124_s0 = inlined_call_operand.vmem [shape: f32[8,32], index: 0, kind: input, shape index: {}]   ;;  %s125_s1 = inlined_call_operand.vmem [shape: f32[8,32], index: 1, kind: input, shape index: {}]   ;;  %s126_s2 = inlined_call_operand.hbm [shape: f32[1,1,1], index: 2, kind: output, shape index: {}]  }
   0x1   :  { %v12_v0 = vld [vmem:[%s124_s0] sm:$0xff] }
   0x2   :  { %7 = vsyncpa [#allocation3], 0  ;;  %v15_v1 = vsel %vm14_vm0, %v12_v0, -inf  ;;  %v13_v11 = vld [vmem:[%s125_s1] sm:$0xff]  ;;  %s87_s12 = smov [#allocation2]   ;;  %vm40_vm1 = vcmask 0  }
   0x3   :  { %16 = vmax.xlane.f32.xlu0 %v15_v1  ;;  %s48_s13 = sshll.u32 %s87_s12, 4  ;;  %s49_s13 = int_to_ptr.vmem [resolvable:$true] %s48_s13 }
   0x4   :  { %s63_s1 = scalar_lea.vmem %s49_s13, 16  ;;  %s67_s15 = scalar_lea.vmem %s49_s13, 32 }
   0x5   :  { %p64_p0 = scmp.ne.s32.totalorder %s49_s13, %s63_s1  ;;  %p68_p1 = scmp.lt.s32.totalorder %s49_s13, %s49_s13 }
   0x6   :  { %p69_p2 = scmp.lt.s32.totalorder %s67_s15, %s63_s1 }
   0x8   :  { %p70_p3 = por %p69_p2, %p68_p1 }
   0xa   :  { %p71_p4 = pnand %p70_p3, %p64_p0 }
  0x90   :  { %v17_v2 = vpop.xlane.xlu0 %16 }
  0x91   :  { %v18_v3 = vsub.f32 %v12_v0, %v17_v2 }
  0x93   :  { %v19_v4 = vmul.f32 1.442695, %v18_v3 }
  0x95   :  { %59 = vpow2.f32 %v19_v4 }
  0x9f   :  { %v60_v5 = vpop.eup %59 }
  0xa0   :  { %v21_v6 = vsel %vm14_vm0, %v60_v5, 0.0 }
  0xa1   :  { %22 = vadd.xlane.f32.xlu0 %v21_v6 }
 0x12e   :  { %v23_v7 = vpop.xlane.xlu0 %22 }
 0x12f   :  { %61 = vlog2.f32 %v23_v7 }
 0x139   :  { %v62_v8 = vpop.eup %61 }
 0x13a   :  { %v25_v9 = vmul.f32 0.6931472, %v62_v8 }
 0x13c   :  { %v26_v10 = vadd.f32 %v25_v9, %v17_v2 }
 0x13e   :  { %v27_v12 = vsub.f32 %v26_v10, %v12_v0 }
 0x140   :  { %v28_v13 = vmul.f32 %v27_v12, %v13_v11 }
 0x142   :  { %v29_v14 = vsel %vm14_vm0, %v28_v13, 0.0 }
 0x143   :  { %30 = vadd.xlane.f32.xlu1 %v29_v14 }
 0x1d0   :  { %v31_v15 = vpop.xlane.xlu1 %30 }
 0x1d1   :  { %v32_v16 = vrot.slane %v31_v15, 4 }
 0x1d3   :  { %v33_v17 = vadd.f32 %v32_v16, %v31_v15 }
 0x1d5   :  { %v34_v18 = vrot.slane %v33_v17, 2 }
 0x1d7   :  { %v35_v19 = vadd.f32 %v34_v18, %v33_v17 }
 0x1d9   :  { %v36_v20 = vrot.slane %v35_v19, 1 }
 0x1db   :  { %v37_v21 = vadd.f32 %v36_v20, %v35_v19 }
 0x1dd   :  { %56 = vpush %v37_v21 }
 0x20e   :  { %s57_s14 = spop %56 }
 0x20f   :  { %v39_v22 = vstv %s57_s14 }
 0x210   :  { %41 = vst.msk [vmem:[#allocation2] sm:$0x1] %vm40_vm1, %v39_v22 }
 0x211   :  { %74 = shalt.err (!%p71_p4)
}
 0x212   :  { %s75_s18 = scalar_lea.hbm %s126_s2, 16 }
 0x213   :  { %p76_p5 = scmp.ne.s32.totalorder %s126_s2, %s75_s18  ;;  %p79_p6 = scmp.lt.u32.totalorder %s75_s18, %s126_s2 }
 0x215   :  { %p81_p7 = pnand %p79_p6, %p76_p5 }
 0x217   :  { %84 = shalt.err (!%p81_p7)
}
 0x218   :  { %51 = dma.vmem_to_hbm [thread:$0]  %s49_s13, 16, %s126_s2, [#allocation3]  }
 0x219   :  { %85 = dma.done.wait [#allocation3], 16  }
 0x21a   :  { %86 = vsyncadd [#allocation3], 4294967280 }
 0x21b   :  { %55 = vsyncpa [#allocation3], 1 }

// kernel: token_label_gt_cross_entropy.3
= control target key start
LH: loop header
LB: loop body
LE: loop exit
PB: predicated region body
PF: predicated region fallthrough
CT: control target
= control target key end

     0   :  { %vm16_vm0 = vcmask 261120   ;;  %s155_s0 = inlined_call_operand.vmem [shape: f32[16,32], index: 0, kind: input, shape index: {}]   ;;  %s156_s1 = inlined_call_operand.vmem [shape: f32[16,32], index: 1, kind: input, shape index: {}]   ;;  %s157_s2 = inlined_call_operand.hbm [shape: f32[1,1,1], index: 2, kind: output, shape index: {}]  }
   0x1   :  { %v12_v0 = vld [vmem:[%s155_s0] sm:$0xff]  ;;  %v13_v1 = vld [vmem:[%s155_s0 + $0x8] sm:$0xff] }
   0x2   :  { %7 = vsyncpa [#allocation3], 0  ;;  %v17_v2 = vsel %vm16_vm0, %v12_v0, -inf  ;;  %v20_v3 = vsel %vm16_vm0, %v13_v1, -inf  ;;  %v14_v22 = vld [vmem:[%s156_s1] sm:$0xff]  ;;  %v15_v24 = vld [vmem:[%s156_s1 + $0x8] sm:$0xff] }
   0x3   :  { %18 = vmax.xlane.f32.xlu0 %v17_v2  ;;  %s109_s16 = smov [#allocation2]   ;;  %vm58_vm1 = vcmask 0  }
   0x4   :  { %s66_s17 = sshll.u32 %s109_s16, 4  ;;  %s67_s17 = int_to_ptr.vmem [resolvable:$true] %s66_s17 }
   0x5   :  { %s85_s18 = scalar_lea.vmem %s67_s17, 16  ;;  %s89_s19 = scalar_lea.vmem %s67_s17, 32 }
   0x6   :  { %p86_p0 = scmp.ne.s32.totalorder %s67_s17, %s85_s18  ;;  %p90_p1 = scmp.lt.s32.totalorder %s67_s17, %s67_s17 }
   0x7   :  { %21 = vmax.xlane.f32.xlu0 %v20_v3  ;;  %p91_p2 = scmp.lt.s32.totalorder %s89_s19, %s85_s18 }
   0x9   :  { %p92_p3 = por %p91_p2, %p90_p1 }
   0xb   :  { %p93_p4 = pnand %p92_p3, %p86_p0 }
  0x90   :  { %v19_v4 = vpop.xlane.xlu0 %18 }
  0x91   :  { %v23_v5 = vsub.f32 %v12_v0, %v19_v4 }
  0x93   :  { %v25_v6 = vmul.f32 1.442695, %v23_v5 }
  0x94   :  { %v22_v7 = vpop.xlane.xlu0 %21 }
  0x95   :  { %77 = vpow2.f32 %v25_v6  ;;  %v24_v8 = vsub.f32 %v13_v1, %v22_v7 }
  0x97   :  { %v27_v9 = vmul.f32 1.442695, %v24_v8 }
  0x99   :  { %79 = vpow2.f32 %v27_v9 }
  0x9f   :  { %v78_v10 = vpop.eup %77 }
  0xa0   :  { %v29_v11 = vsel %vm16_vm0, %v78_v10, 0.0 }
  0xa1   :  { %30 = vadd.xlane.f32.xlu1 %v29_v11 }
  0xa3   :  { %v80_v12 = vpop.eup %79 }
  0xa4   :  { %v32_v13 = vsel %vm16_vm0, %v80_v12, 0.0 }
  0xa5   :  { %33 = vadd.xlane.f32.xlu1 %v32_v13 }
 0x12e   :  { %v31_v14 = vpop.xlane.xlu1 %30 }
 0x12f   :  { %81 = vlog2.f32 %v31_v14 }
 0x132   :  { %v34_v15 = vpop.xlane.xlu1 %33 }
 0x133   :  { %83 = vlog2.f32 %v34_v15 }
 0x139   :  { %v82_v16 = vpop.eup %81 }
 0x13a   :  { %v36_v17 = vmul.f32 0.6931472, %v82_v16 }
 0x13c   :  { %v39_v18 = vadd.f32 %v36_v17, %v19_v4 }
 0x13d   :  { %v84_v19 = vpop.eup %83 }
 0x13e   :  { %v38_v20 = vmul.f32 0.6931472, %v84_v19  ;;  %v41_v21 = vsub.f32 %v39_v18, %v12_v0 }
 0x140   :  { %v40_v23 = vadd.f32 %v38_v20, %v22_v7  ;;  %v43_v26 = vmul.f32 %v41_v21, %v14_v22 }
 0x142   :  { %v42_v25 = vsub.f32 %v40_v23, %v13_v1  ;;  %v45_v28 = vsel %vm16_vm0, %v43_v26, 0.0 }
 0x144   :  { %v44_v27 = vmul.f32 %v42_v25, %v15_v24 }
 0x146   :  { %v46_v29 = vsel %vm16_vm0, %v44_v27, 0.0 }
 0x147   :  { %v47_v30 = vadd.f32 %v46_v29, %v45_v28 }
 0x149   :  { %48 = vadd.xlane.f32.xlu0 %v47_v30 }
 0x1d6   :  { %v49_v31 = vpop.xlane.xlu0 %48 }
 0x1d7   :  { %v50_v32 = vrot.slane %v49_v31, 4 }
 0x1d9   :  { %v51_v33 = vadd.f32 %v50_v32, %v49_v31 }
 0x1db   :  { %v52_v34 = vrot.slane %v51_v33, 2 }
 0x1dd   :  { %v53_v35 = vadd.f32 %v52_v34, %v51_v33 }
 0x1df   :  { %v54_v36 = vrot.slane %v53_v35, 1 }
 0x1e1   :  { %v55_v37 = vadd.f32 %v54_v36, %v53_v35 }
 0x1e3   :  { %74 = vpush %v55_v37 }
 0x214   :  { %s75_s1 = spop %74 }
 0x215   :  { %v57_v38 = vstv %s75_s1 }
 0x216   :  { %59 = vst.msk [vmem:[#allocation2] sm:$0x1] %vm58_vm1, %v57_v38 }
 0x217   :  { %96 = shalt.err (!%p93_p4)
}
 0x218   :  { %s97_s22 = scalar_lea.hbm %s157_s2, 16 }
 0x219   :  { %p98_p5 = scmp.ne.s32.totalorder %s157_s2, %s97_s22  ;;  %p101_p6 = scmp.lt.u32.totalorder %s97_s22, %s157_s2 }
 0x21b   :  { %p103_p7 = pnand %p101_p6, %p98_p5 }
 0x21d   :  { %106 = shalt.err (!%p103_p7)
}
 0x21e   :  { %69 = dma.vmem_to_hbm [thread:$0]  %s67_s17, 16, %s157_s2, [#allocation3]  }
 0x21f   :  { %107 = dma.done.wait [#allocation3], 16  }
 0x220   :  { %108 = vsyncadd [#allocation3], 4294967280 }
 0x221   :  { %73 = vsyncpa [#allocation3], 1 }

</bundles_post_ra>
